<compile_context>
chip_gen: v7x
topology: tpu7x:2x2x1
jax: 0.10.0
libtpu: 0.0.40
codegen_flags: <defaults>
</compile_context>

<pallas_src>
import functools

import jax
import jax.numpy as jnp
from jax.experimental import pallas as pl
from jax.experimental.pallas import tpu as pltpu


def _round_up(n, m):
    return ((n + m - 1) // m) * m


def _ffn_kernel(x_ref, w1_ref, b1_ref, w2_ref, b2_ref, gamma_ref, beta_ref, o_ref):
    # x_ref: (TM, H) bf16      w1_ref: (H, 4H) bf16   b1_ref: (1, 4H) f32
    # w2_ref: (4H, H) bf16     b2_ref: (1, H) f32     gamma/beta: (1, H) f32
    # o_ref: (TM, H) out dtype
    # fc1 + bias + ReLU   (dropout == identity in eval mode)
    h = jnp.dot(x_ref[...], w1_ref[...], preferred_element_type=jnp.float32)
    h = jnp.maximum(h + b1_ref[...], 0.0)

    # fc2 + bias          (dropout == identity in eval mode)
    # Activation goes back to bf16 for the MXU; accumulation stays f32.
    y = jnp.dot(h.astype(jnp.bfloat16), w2_ref[...],
                preferred_element_type=jnp.float32)
    y = y + b2_ref[...]

    # Reference computes LayerNorm(y + y) == LayerNorm(2*y) (the residual `x`
    # was reassigned in the PyTorch module). Fold the factor 2 analytically:
    #   (2y - mean(2y)) * rsqrt(var(2y) + eps)
    # = (y  - mean(y))  * rsqrt(var(y)  + eps/4)
    hdim = y.shape[-1]
    inv_h = 1.0 / hdim
    mean = jnp.sum(y, axis=-1, keepdims=True) * inv_h
    centered = y - mean
    var = jnp.sum(centered * centered, axis=-1, keepdims=True) * inv_h
    inv_std = jax.lax.rsqrt(var + 0.25 * 1e-5)
    normed = centered * inv_std
    o_ref[...] = (normed * gamma_ref[...] + beta_ref[...]).astype(o_ref.dtype)


@functools.partial(jax.jit, static_argnames=("tile_m",))
def feedforward_pallas(x, w1, b1, w2, b2, gamma, beta, *, tile_m=256):
    """x: (..., H). Params follow nn.Linear convention: y = x @ W.T + b,
    so w1/w2 passed here are already transposed to (in, out)."""
    orig_shape = x.shape
    H = orig_shape[-1]
    H4 = 4 * H
    xf = x.reshape(-1, H)
    N = xf.shape[0]

    # Effective token tile: large for MXU occupancy, but never larger than the
    # (sublane-aligned) token count. Padded rows are computed and discarded.
    tm = min(tile_m, _round_up(N, 8))
    n_pad = _round_up(N, tm)
    if n_pad != N:
        xf = jnp.pad(xf, ((0, n_pad - N), (0, 0)))

    # bf16 operands for the MXU; f32 accumulation and f32 LN epilogue in-kernel.
    x_bf = xf.astype(jnp.bfloat16)
    w1_bf = w1.astype(jnp.bfloat16)
    w2_bf = w2.astype(jnp.bfloat16)

    b1_2d = b1.reshape(1, H4).astype(jnp.float32)
    b2_2d = b2.reshape(1, H).astype(jnp.float32)
    g_2d = gamma.reshape(1, H).astype(jnp.float32)
    bt_2d = beta.reshape(1, H).astype(jnp.float32)

    grid = (n_pad // tm,)

    # VMEM budget: double-buffered x/out tiles + (double-buffered) resident
    # bf16 weights + f32 fc1 intermediate + small params, with 1.5x headroom.
    vmem_bytes = int(1.5 * (
        2 * tm * H * 2                    # x tiles (bf16)
        + 2 * tm * H * x.dtype.itemsize   # out tiles
        + 2 * (H * H4 + H4 * H) * 2       # W1 + W2 (bf16), double-buffered
        + tm * H4 * 4                     # fc1 intermediate (f32)
        + 8 * H4 * 4))                    # biases / LN params
    vmem_bytes = max(32 << 20, min(vmem_bytes, 100 << 20))

    cost = pl.CostEstimate(
        flops=2 * n_pad * H * H4 * 2,                   # two matmuls
        transcendentals=n_pad,                          # one rsqrt per row
        bytes_accessed=(n_pad * H * 2                   # x in (bf16)
                        + n_pad * H * x.dtype.itemsize  # out
                        + (H * H4 + H4 * H) * 2         # weights (bf16)
                        + 8 * H4 * 4),
    )

    out = pl.pallas_call(
        _ffn_kernel,
        out_shape=jax.ShapeDtypeStruct((n_pad, H), x.dtype),
        grid_spec=pltpu.PrefetchScalarGridSpec(
            num_scalar_prefetch=0,
            grid=grid,
            in_specs=[
                pl.BlockSpec((tm, H), lambda i: (i, 0)),    # x tile (bf16)
                pl.BlockSpec((H, H4), lambda i: (0, 0)),    # W1 (in, out)
                pl.BlockSpec((1, H4), lambda i: (0, 0)),    # b1
                pl.BlockSpec((H4, H), lambda i: (0, 0)),    # W2 (in, out)
                pl.BlockSpec((1, H), lambda i: (0, 0)),     # b2
                pl.BlockSpec((1, H), lambda i: (0, 0)),     # gamma
                pl.BlockSpec((1, H), lambda i: (0, 0)),     # beta
            ],
            out_specs=pl.BlockSpec((tm, H), lambda i: (i, 0)),
        ),
        compiler_params=pltpu.CompilerParams(
            dimension_semantics=("parallel",),
            vmem_limit_bytes=vmem_bytes,
        ),
        cost_estimate=cost,
    )(x_bf, w1_bf, b1_2d, w2_bf, b2_2d, g_2d, bt_2d)

    if n_pad != N:
        out = out[:N]
    return out.reshape(orig_shape)


def _reference(x, w1, b1, w2, b2, gamma, beta):
    h = jnp.maximum(x @ w1 + b1, 0.0)
    y = h @ w2 + b2
    z = y + y
    mean = jnp.mean(z, axis=-1, keepdims=True)
    var = jnp.mean((z - mean) ** 2, axis=-1, keepdims=True)
    return (z - mean) * jax.lax.rsqrt(var + 1e-5) * gamma + beta


if __name__ == "__main__":
    B, S, H = 2, 8, 32   # batch, seq, hidden_size
    H4 = 4 * H

    key = jax.random.PRNGKey(0)
    kx, k1, k2, k3, k4 = jax.random.split(key, 5)

    x = jax.random.normal(kx, (B, S, H), dtype=jnp.float32)

    # Deterministic parameter init (mimicking nn.Linear scale), stored as (in, out).
    w1 = jax.random.normal(k1, (H, H4), dtype=jnp.float32) * (1.0 / jnp.sqrt(H))
    b1 = jax.random.normal(k2, (H4,), dtype=jnp.float32) * 0.01
    w2 = jax.random.normal(k3, (H4, H), dtype=jnp.float32) * (1.0 / jnp.sqrt(H4))
    b2 = jax.random.normal(k4, (H,), dtype=jnp.float32) * 0.01
    gamma = jnp.ones((H,), dtype=jnp.float32)
    beta = jnp.zeros((H,), dtype=jnp.float32)

    out = feedforward_pallas(x, w1, b1, w2, b2, gamma, beta)
    out = jax.block_until_ready(out)

    ref = _reference(x, w1, b1, w2, b2, gamma, beta)
    assert out.shape == (B, S, H)
    # bf16 matmul operands (f32 accumulation) vs all-f32 reference => relaxed tol.
    assert jnp.allclose(out, ref, atol=5e-2, rtol=5e-2), "mismatch vs reference"

    print("KERNEL_OK")
</pallas_src>

<mosaic_0001>
module attributes {stable_mosaic.version = 11 : i64} {
  func.func @_ffn_kernel(%arg0: i32, %arg1: memref<16x32xbf16, #tpu.memory_space<vmem>>, %arg2: memref<32x128xbf16, #tpu.memory_space<vmem>>, %arg3: memref<1x128xf32, #tpu.memory_space<vmem>>, %arg4: memref<128x32xbf16, #tpu.memory_space<vmem>>, %arg5: memref<1x32xf32, #tpu.memory_space<vmem>>, %arg6: memref<1x32xf32, #tpu.memory_space<vmem>>, %arg7: memref<1x32xf32, #tpu.memory_space<vmem>>, %arg8: memref<16x32xf32, #tpu.memory_space<vmem>>) attributes {dimension_semantics = [#tpu.dimension_semantics<parallel>], iteration_bounds = array<i64: 1>, scalar_prefetch = 0 : i64, scratch_operands = 0 : i64, tpu.core_type = #tpu.core_type<tc>, window_params = [{transform_indices = @transform_0, window_bounds = array<i64: 16, 32>}, {pipeline_mode = #tpu.pipeline_mode<synchronous>, transform_indices = @transform_1, window_bounds = array<i64: 32, 128>}, {pipeline_mode = #tpu.pipeline_mode<synchronous>, transform_indices = @transform_2, window_bounds = array<i64: 1, 128>}, {pipeline_mode = #tpu.pipeline_mode<synchronous>, transform_indices = @transform_3, window_bounds = array<i64: 128, 32>}, {pipeline_mode = #tpu.pipeline_mode<synchronous>, transform_indices = @transform_4, window_bounds = array<i64: 1, 32>}, {pipeline_mode = #tpu.pipeline_mode<synchronous>, transform_indices = @transform_5, window_bounds = array<i64: 1, 32>}, {pipeline_mode = #tpu.pipeline_mode<synchronous>, transform_indices = @transform_6, window_bounds = array<i64: 1, 32>}, {transform_indices = @transform_7, window_bounds = array<i64: 16, 32>}]} {
    %c0 = arith.constant 0 : index
    %c0_0 = arith.constant 0 : index
    %0 = vector.load %arg1[%c0, %c0_0] : memref<16x32xbf16, #tpu.memory_space<vmem>>, vector<16x32xbf16>
    %c0_1 = arith.constant 0 : index
    %c0_2 = arith.constant 0 : index
    %1 = vector.load %arg2[%c0_1, %c0_2] : memref<32x128xbf16, #tpu.memory_space<vmem>>, vector<32x128xbf16>
    %cst = arith.constant dense<0.000000e+00> : vector<16x128xf32>
    %2 = tpu.matmul %0, %1, %cst {dimension_numbers = #tpu.dot_dimension_numbers<[1], [0], [0], [1], [0, 0, 1, 1], [], []>} : vector<16x32xbf16>, vector<32x128xbf16>, vector<16x128xf32> -> vector<16x128xf32>
    %c0_3 = arith.constant 0 : index
    %c0_4 = arith.constant 0 : index
    %3 = vector.load %arg3[%c0_3, %c0_4] : memref<1x128xf32, #tpu.memory_space<vmem>>, vector<1x128xf32>
    %4 = vector.broadcast %3 : vector<1x128xf32> to vector<16x128xf32>
    %5 = arith.addf %2, %4 : vector<16x128xf32>
    %cst_5 = arith.constant 0.000000e+00 : f32
    %6 = vector.broadcast %cst_5 : f32 to vector<16x128xf32>
    %7 = arith.maximumf %5, %6 : vector<16x128xf32>
    %8 = arith.truncf %7 : vector<16x128xf32> to vector<16x128xbf16>
    %c0_6 = arith.constant 0 : index
    %c0_7 = arith.constant 0 : index
    %9 = vector.load %arg4[%c0_6, %c0_7] : memref<128x32xbf16, #tpu.memory_space<vmem>>, vector<128x32xbf16>
    %cst_8 = arith.constant dense<0.000000e+00> : vector<16x32xf32>
    %10 = tpu.matmul %8, %9, %cst_8 {dimension_numbers = #tpu.dot_dimension_numbers<[1], [0], [0], [1], [0, 0, 1, 1], [], []>} : vector<16x128xbf16>, vector<128x32xbf16>, vector<16x32xf32> -> vector<16x32xf32>
    %c0_9 = arith.constant 0 : index
    %c0_10 = arith.constant 0 : index
    %11 = vector.load %arg5[%c0_9, %c0_10] : memref<1x32xf32, #tpu.memory_space<vmem>>, vector<1x32xf32>
    %12 = vector.broadcast %11 : vector<1x32xf32> to vector<16x32xf32>
    %13 = arith.addf %10, %12 : vector<16x32xf32>
    %cst_11 = arith.constant dense<0.000000e+00> : vector<16xf32>
    %14 = vector.multi_reduction <add>, %13, %cst_11 [1] : vector<16x32xf32> to vector<16xf32>
    %15 = vector.shape_cast %14 : vector<16xf32> to vector<16x1xf32>
    %cst_12 = arith.constant 3.125000e-02 : f32
    %16 = vector.broadcast %cst_12 : f32 to vector<16x1xf32>
    %17 = arith.mulf %15, %16 : vector<16x1xf32>
    %18 = vector.broadcast %17 : vector<16x1xf32> to vector<16x32xf32>
    %19 = arith.subf %13, %18 : vector<16x32xf32>
    %20 = arith.mulf %19, %19 : vector<16x32xf32>
    %cst_13 = arith.constant dense<0.000000e+00> : vector<16xf32>
    %21 = vector.multi_reduction <add>, %20, %cst_13 [1] : vector<16x32xf32> to vector<16xf32>
    %22 = vector.shape_cast %21 : vector<16xf32> to vector<16x1xf32>
    %cst_14 = arith.constant 3.125000e-02 : f32
    %23 = vector.broadcast %cst_14 : f32 to vector<16x1xf32>
    %24 = arith.mulf %22, %23 : vector<16x1xf32>
    %cst_15 = arith.constant 2.500000e-06 : f32
    %25 = vector.broadcast %cst_15 : f32 to vector<16x1xf32>
    %26 = arith.addf %24, %25 : vector<16x1xf32>
    %27 = math.rsqrt %26 : vector<16x1xf32>
    %28 = vector.broadcast %27 : vector<16x1xf32> to vector<16x32xf32>
    %29 = arith.mulf %19, %28 : vector<16x32xf32>
    %c0_16 = arith.constant 0 : index
    %c0_17 = arith.constant 0 : index
    %30 = vector.load %arg6[%c0_16, %c0_17] : memref<1x32xf32, #tpu.memory_space<vmem>>, vector<1x32xf32>
    %31 = vector.broadcast %30 : vector<1x32xf32> to vector<16x32xf32>
    %32 = arith.mulf %29, %31 : vector<16x32xf32>
    %c0_18 = arith.constant 0 : index
    %c0_19 = arith.constant 0 : index
    %33 = vector.load %arg7[%c0_18, %c0_19] : memref<1x32xf32, #tpu.memory_space<vmem>>, vector<1x32xf32>
    %34 = vector.broadcast %33 : vector<1x32xf32> to vector<16x32xf32>
    %35 = arith.addf %32, %34 : vector<16x32xf32>
    %c0_20 = arith.constant 0 : index
    %c0_21 = arith.constant 0 : index
    %36 = vector.load %arg8[%c0_20, %c0_21] : memref<16x32xf32, #tpu.memory_space<vmem>>, vector<16x32xf32>
    tpu.vector_store %arg8[%c0_20, %c0_21], %35 {strides = array<i32>} : memref<16x32xf32, #tpu.memory_space<vmem>>, vector<16x32xf32>,
    return
  }
  func.func @transform_0(%arg0: i32) -> (i32, i32) {
    %c0_i32 = arith.constant 0 : i32
    %c0_i32_0 = arith.constant 0 : i32
    return %arg0, %c0_i32 : i32, i32
  }
  func.func @transform_1(%arg0: i32) -> (i32, i32) {
    %c0_i32 = arith.constant 0 : i32
    %c0_i32_0 = arith.constant 0 : i32
    %c0_i32_1 = arith.constant 0 : i32
    return %c0_i32, %c0_i32_0 : i32, i32
  }
  func.func @transform_2(%arg0: i32) -> (i32, i32) {
    %c0_i32 = arith.constant 0 : i32
    %c0_i32_0 = arith.constant 0 : i32
    %c0_i32_1 = arith.constant 0 : i32
    return %c0_i32, %c0_i32_0 : i32, i32
  }
  func.func @transform_3(%arg0: i32) -> (i32, i32) {
    %c0_i32 = arith.constant 0 : i32
    %c0_i32_0 = arith.constant 0 : i32
    %c0_i32_1 = arith.constant 0 : i32
    return %c0_i32, %c0_i32_0 : i32, i32
  }
  func.func @transform_4(%arg0: i32) -> (i32, i32) {
    %c0_i32 = arith.constant 0 : i32
    %c0_i32_0 = arith.constant 0 : i32
    %c0_i32_1 = arith.constant 0 : i32
    return %c0_i32, %c0_i32_0 : i32, i32
  }
  func.func @transform_5(%arg0: i32) -> (i32, i32) {
    %c0_i32 = arith.constant 0 : i32
    %c0_i32_0 = arith.constant 0 : i32
    %c0_i32_1 = arith.constant 0 : i32
    return %c0_i32, %c0_i32_0 : i32, i32
  }
  func.func @transform_6(%arg0: i32) -> (i32, i32) {
    %c0_i32 = arith.constant 0 : i32
    %c0_i32_0 = arith.constant 0 : i32
    %c0_i32_1 = arith.constant 0 : i32
    return %c0_i32, %c0_i32_0 : i32, i32
  }
  func.func @transform_7(%arg0: i32) -> (i32, i32) {
    %c0_i32 = arith.constant 0 : i32
    %c0_i32_0 = arith.constant 0 : i32
    return %arg0, %c0_i32 : i32, i32
  }
}

</mosaic_0001>

<bundles_post_ra>
// kernel: feedforward_pallas.1
= control target key start
LH: loop header
LB: loop body
LE: loop exit
PB: predicated region body
PF: predicated region fallthrough
CT: control target
= control target key end

     0   :  { %v380_v1 = vmov 0.0   ;;  %vm381_vm0 = vmmov 0   ;;  %vm58_vm1 = vcmask 261120   ;;  %s489_s0 = inlined_call_operand.vmem [shape: bf16[16,32], index: 0, kind: input, shape index: {}]   ;;  %s490_s1 = inlined_call_operand.vmem [shape: bf16[32,128], index: 1, kind: input, shape index: {}]   ;;  %s491_s2 = inlined_call_operand.vmem [shape: f32[1,128], index: 2, kind: input, shape index: {}]   ;;  %s492_s3 = inlined_call_operand.vmem [shape: bf16[128,32], index: 3, kind: input, shape index: {}]   ;;  %s493_s4 = inlined_call_operand.vmem [shape: f32[1,32], index: 4, kind: input, shape index: {}]   ;;  %s494_s5 = inlined_call_operand.vmem [shape: f32[1,32], index: 5, kind: input, shape index: {}]   ;;  %s495_s6 = inlined_call_operand.vmem [shape: f32[1,32], index: 6, kind: input, shape index: {}]   ;;  %s496_s7 = inlined_call_operand.hbm [shape: f32[16,32], index: 7, kind: output, shape index: {}]  }
   0x1   :  { %v341_v0 = vld [vmem:[%s490_s1] sm:$0xff]   ;;  %308 = vmatprep.subr.bf16.mxu0 %v380_v1  ;;  %316 = vmatprep.subr.bf16.mxu1 %v380_v1  ;;  %v342_v2 = vld [vmem:[%s490_s1 + $0x8] sm:$0xff]   ;;  %v346_v6 = vld [vmem:[%s492_s3 + $0x10] sm:$0xff]  }
   0x2   :  { %309 = vmatpush3.bf16.msra.mxu0 %v341_v0  ;;  %312 = vmatprep.mubr.msk.bf16.mxu0 %vm381_vm0, %v380_v1  ;;  %v344_v3 = vld [vmem:[%s492_s3] sm:$0xff]   ;;  %v345_v5 = vld [vmem:[%s492_s3 + $0x8] sm:$0xff]  }
   0x3   :  { %310 = vmatprep.subr.bf16.mxu0 %v380_v1  ;;  %332 = vmatprep.mubr.msk.bf16.mxu1 %vm381_vm0, %v380_v1  ;;  %v343_v4 = vld [vmem:[%s489_s0] sm:$0xff]  }
   0x4   :  { %317 = vmatpush3.bf16.msra.mxu1 %v344_v3 }
   0x5   :  { %318 = vmatprep.subr.bf16.mxu1 %v380_v1 }
   0x6   :  { %311 = vmatpush3.bf16.msra.mxu0 %v342_v2 }
   0x8   :  { %319 = vmatpush3.bf16.msra.mxu1 %v345_v5 }
   0x9   :  { %313 = vmatmul.mubr.msk.bf16.vlgmr.msra.gmra.mrb[0].mxu0 %vm58_vm1, %v343_v4  ;;  %320 = vmatprep.subr.bf16.mxu1 %v380_v1 }
   0xa   :  { %12 = vsyncpa [#allocation3], 0  ;;  %v347_v7 = vld [vmem:[%s492_s3 + $0x18] sm:$0xff]   ;;  %v348_v8 = vld [vmem:[%s492_s3 + $0x20] sm:$0xff]   ;;  %s382_s26 = smov [#allocation2]  }
   0xb   :  { %v349_v9 = vld [vmem:[%s492_s3 + $0x28] sm:$0xff]   ;;  %v350_v10 = vld [vmem:[%s492_s3 + $0x30] sm:$0xff]   ;;  %v351_v11 = vld [vmem:[%s492_s3 + $0x38] sm:$0xff]   ;;  %s269_s27 = sshll.u32 %s382_s26, 4  ;;  %s270_s27 = int_to_ptr.vmem [resolvable:$true] %s269_s27 }
   0xc   :  { %321 = vmatpush3.bf16.msra.mxu1 %v346_v6  ;;  %v280_v12 = vld [vmem:[%s491_s2] ss:$0 sm:$0xff]  ;;  %s356_s28 = scalar_lea.vmem %s270_s27, 256  ;;  %p361_p1 = scmp.lt.s32.totalorder %s270_s27, %s270_s27 }
   0xd   :  { %322 = vmatprep.subr.bf16.mxu1 %v380_v1  ;;  %v285_v22 = vld [vmem:[%s493_s4] ss:$0 sm:$0xff]  ;;  %p357_p0 = scmp.ne.s32.totalorder %s270_s27, %s356_s28  ;;  %p362_p2 = scmp.lt.s32.totalorder %s356_s28, %s356_s28 }
   0xe   :  { %v294_v48 = vld [vmem:[%s494_s5] ss:$0 sm:$0xff] }
   0xf   :  { %v295_v50 = vld [vmem:[%s495_s6] ss:$0 sm:$0xff]  ;;  %p363_p3 = por %p362_p2, %p361_p1 }
  0x10   :  { %323 = vmatpush3.bf16.msra.mxu1 %v347_v7 }
  0x11   :  { %324 = vmatprep.subr.bf16.mxu1 %v380_v1  ;;  %p364_p4 = pnand %p363_p3, %p357_p0 }
  0x14   :  { %325 = vmatpush3.bf16.msra.mxu1 %v348_v8 }
  0x15   :  { %326 = vmatprep.subr.bf16.mxu1 %v380_v1 }
  0x18   :  { %327 = vmatpush3.bf16.msra.mxu1 %v349_v9 }
  0x19   :  { %328 = vmatprep.subr.bf16.mxu1 %v380_v1 }
  0x1c   :  { %329 = vmatpush3.bf16.msra.mxu1 %v350_v10 }
  0x1d   :  { %330 = vmatprep.subr.bf16.mxu1 %v380_v1 }
  0x20   :  { %331 = vmatpush3.bf16.msra.mxu1 %v351_v11 }
  0xdc   :  { %v96_v13 = vpop.f32.mrb[0].mxu0 }
  0xdd   :  { %v97_v14 = vadd.f32 %v280_v12, %v96_v13  ;;  %v314_v15 = vpop.f32.mrb[1].mxu0 }
  0xde   :  { %v99_v16 = vpop.f32.mrb[2].mxu0 }
  0xdf   :  { %v100_v17 = vadd.f32 %v280_v12, %v99_v16  ;;  %v315_v18 = vpop.f32.mrb[3].mxu0  ;;  %v103_v19 = vmax.f32 %v97_v14, 0.0 }
  0xe1   :  { %v104_v20 = vmax.f32 %v100_v17, 0.0 }
  0xe3   :  { %v105_v21 = vpack.c.bf16 %v104_v20, %v103_v19 }
  0xe5   :  { %333 = vmatmul.mubr.bf16.vlgmr.msra.gmra.mrb[0].mxu1 %v105_v21 }
 0x1b8   :  { %v211_v23 = vpop.f32.mrb[0].mxu1 }
 0x1b9   :  { %v212_v24 = vadd.f32 %v285_v22, %v211_v23  ;;  %v334_v25 = vpop.f32.mrb[1].mxu1 }
 0x1ba   :  { %v214_v26 = vpop.f32.mrb[2].mxu1 }
 0x1bb   :  { %v215_v27 = vadd.f32 %v285_v22, %v214_v26  ;;  %v335_v28 = vpop.f32.mrb[3].mxu1  ;;  %v218_v29 = vsel %vm58_vm1, %v212_v24, 0.0 }
 0x1bc   :  { %219 = vadd.xlane.f32.xlu0 %v218_v29 }
 0x1bd   :  { %v221_v30 = vsel %vm58_vm1, %v215_v27, 0.0 }
 0x1c0   :  { %222 = vadd.xlane.f32.xlu0 %v221_v30 }
 0x249   :  { %v220_v31 = vpop.xlane.xlu0 %219 }
 0x24a   :  { %v224_v32 = vmul.f32 0.03125, %v220_v31 }
 0x24c   :  { %v226_v33 = vsub.f32 %v212_v24, %v224_v32 }
 0x24d   :  { %v223_v34 = vpop.xlane.xlu0 %222 }
 0x24e   :  { %v225_v35 = vmul.f32 0.03125, %v223_v34  ;;  %v228_v36 = vmul.f32 %v226_v33, %v226_v33 }
 0x250   :  { %v227_v37 = vsub.f32 %v215_v27, %v225_v35  ;;  %v230_v38 = vsel %vm58_vm1, %v228_v36, 0.0 }
 0x251   :  { %231 = vadd.xlane.f32.xlu1 %v230_v38 }
 0x252   :  { %v229_v39 = vmul.f32 %v227_v37, %v227_v37 }
 0x254   :  { %v233_v40 = vsel %vm58_vm1, %v229_v39, 0.0 }
 0x255   :  { %234 = vadd.xlane.f32.xlu1 %v233_v40 }
 0x2de   :  { %v232_v41 = vpop.xlane.xlu1 %231 }
 0x2df   :  { %v236_v42 = vmul.f32 0.03125, %v232_v41 }
 0x2e1   :  { %v238_v43 = vadd.f32 2.5e-06, %v236_v42 }
 0x2e2   :  { %v235_v44 = vpop.xlane.xlu1 %234 }
 0x2e3   :  { %352 = vrsqrt.f32 %v238_v43  ;;  %v237_v45 = vmul.f32 0.03125, %v235_v44 }
 0x2e5   :  { %v239_v46 = vadd.f32 2.5e-06, %v237_v45 }
 0x2e7   :  { %354 = vrsqrt.f32 %v239_v46 }
 0x2ed   :  { %v353_v47 = vpop.eup %352 }
 0x2ee   :  { %v242_v49 = vmul.f32 %v353_v47, %v226_v33 }
 0x2f0   :  { %v251_v51 = vmul.f32 %v294_v48, %v242_v49 }
 0x2f1   :  { %v355_v52 = vpop.eup %354 }
 0x2f2   :  { %v243_v53 = vmul.f32 %v355_v52, %v227_v37  ;;  %v260_v54 = vadd.f32 %v295_v50, %v251_v51 }
 0x2f4   :  { %v252_v55 = vmul.f32 %v294_v48, %v243_v53  ;;  %262 = vst.msk [vmem:[#allocation2] sm:$0xff] %vm58_vm1, %v260_v54 }
 0x2f6   :  { %v261_v56 = vadd.f32 %v295_v50, %v252_v55 }
 0x2f8   :  { %263 = vst.msk [vmem:[#allocation2 + $0x8] sm:$0xff] %vm58_vm1, %v261_v56 }
 0x2f9   :  { %367 = shalt.err (!%p364_p4)
}
 0x2fa   :  { %s368_s29 = scalar_lea.hbm %s496_s7, 256 }
 0x2fb   :  { %p369_p5 = scmp.ne.s32.totalorder %s496_s7, %s368_s29  ;;  %p372_p6 = scmp.lt.u32.totalorder %s368_s29, %s496_s7 }
 0x2fd   :  { %p374_p7 = pnand %p372_p6, %p369_p5 }
 0x2ff   :  { %377 = shalt.err (!%p374_p7)
}
 0x300   :  { %s383_s1 = smov 128   ;;  %s384_s11 = smov 8  }
 0x301   :  { %275 = dma.vmem_to_hbm [thread:$0]  %s270_s27, 256, %s496_s7, [#allocation3], %s383_s1, %s383_s1, %s384_s11  }
 0x302   :  { %378 = dma.done.wait [#allocation3], 256  }
 0x303   :  { %379 = vsyncadd [#allocation3], 4294967040 }
 0x304   :  { %279 = vsyncpa [#allocation3], 1 }

</bundles_post_ra>
